<compile_context>
chip_gen: v6e
topology: v6e:2x2x1
jax: 0.10.0
libtpu: 0.0.40
codegen_flags: <defaults>
</compile_context>

<pallas_src>
import jax
import jax.numpy as jnp
from jax.experimental import pallas as pl
from jax.experimental.pallas import tpu as pltpu

_LANES = 128
_TILE_ROWS = 4096          # (4096, 128) f32 = 2 MiB/buffer; in+out double-buffered = 8 MiB
_SMALL_BATCH_ELEMS = 16384  # below this, fused XLA elementwise beats pallas_call overhead


def _quantum_model_kernel(wb_ref, x_ref, o_ref):
    # wb_ref: SMEM (2,) f32 = [weight, bias] of nn.Linear(1, 1)
    # x_ref / o_ref: lane-dense VMEM tiles (tile_rows, 128) in the I/O dtype
    w = wb_ref[0]
    b = wb_ref[1]
    theta = x_ref[...].astype(jnp.float32) * w + b   # fc: scalar broadcast-FMA (VPU)
    c = jnp.cos(theta)                               # single EUP transcendental
    o_ref[...] = (c * c).astype(o_ref.dtype)         # <Z (x) Z> = cos(theta)^2


def quantum_model_forward(x, w, b, *, small_batch_threshold=_SMALL_BATCH_ELEMS):
    """QuantumModel forward.  x: (B, 1), w: (1, 1), b: (1,) -> (B, 1) in x.dtype."""
    B = x.shape[0]
    orig_dtype = x.dtype

    w_s = w.reshape(()).astype(jnp.float32)
    b_s = b.reshape(()).astype(jnp.float32)

    # Small-batch fallback: one fused XLA elementwise pass, no launch/pad cost.
    if B < small_batch_threshold:
        theta = x.astype(jnp.float32) * w_s + b_s
        return (jnp.cos(theta) ** 2).astype(orig_dtype)

    # Keep HBM traffic in the caller's dtype when it is TPU-friendly.
    io_dtype = orig_dtype if orig_dtype in (jnp.float32, jnp.bfloat16) else jnp.float32
    sub = 16 if io_dtype == jnp.bfloat16 else 8      # sublane packing granularity

    flat = x.reshape(-1)
    if flat.dtype != io_dtype:
        flat = flat.astype(io_dtype)
    pad = (-B) % _LANES
    if pad:
        flat = jnp.pad(flat, (0, pad))               # pad only to next multiple of 128
    rows = flat.shape[0] // _LANES
    x2d = flat.reshape(rows, _LANES)                 # lane-dense; free bitcast when pad == 0

    if rows <= sub:
        tile_rows = rows                             # single full-array block
    else:
        half = -(-rows // 2)                         # >= 2 steps so v7x uses both TCs
        tile_rows = min(_TILE_ROWS, -(-half // sub) * sub)
    grid = (pl.cdiv(rows, tile_rows),)               # trailing partial block is masked

    wb = jnp.concatenate([w.reshape(-1), b.reshape(-1)]).astype(jnp.float32)  # (2,)

    n = rows * _LANES
    itemsize = jnp.dtype(io_dtype).itemsize

    out2d = pl.pallas_call(
        _quantum_model_kernel,
        out_shape=jax.ShapeDtypeStruct((rows, _LANES), io_dtype),
        grid_spec=pltpu.PrefetchScalarGridSpec(
            num_scalar_prefetch=0,
            grid=grid,
            in_specs=[
                pl.BlockSpec(memory_space=pltpu.MemorySpace.SMEM),     # [w, b] scalars
                pl.BlockSpec((tile_rows, _LANES), lambda i: (i, 0)),   # x tile
            ],
            out_specs=pl.BlockSpec((tile_rows, _LANES), lambda i: (i, 0)),
        ),
        compiler_params=pltpu.CompilerParams(
            dimension_semantics=("parallel",)),
        cost_estimate=pl.CostEstimate(
            flops=3 * n,
            transcendentals=n,
            bytes_accessed=2 * n * itemsize),
    )(wb, x2d)

    out = out2d.reshape(-1)
    if pad:
        out = out[:B]
    return out.reshape(B, 1).astype(orig_dtype)


if __name__ == "__main__":
    key = jax.random.PRNGKey(0)
    kx, kw, kb = jax.random.split(key, 3)

    # Deterministic Linear(1,1) parameters (PyTorch would use U(-k,k) here).
    w = jax.random.uniform(kw, (1, 1), dtype=jnp.float32, minval=-1.0, maxval=1.0)
    b = jax.random.uniform(kb, (1,), dtype=jnp.float32, minval=-1.0, maxval=1.0)

    def ref_fn(xv):
        # Reference in plain JAX: fc then <ZZ> = cos(theta)^2.
        return jnp.cos(xv.astype(jnp.float32) @ w.T + b) ** 2

    # 1) Pallas path forced at a small batch (shape from the module: (B, 1)).
    B = 8
    x = jax.random.normal(kx, (B, 1), dtype=jnp.float32)
    out = jax.block_until_ready(quantum_model_forward(x, w, b, small_batch_threshold=0))
    assert out.shape == (B, 1)
    assert jnp.allclose(out, ref_fn(x), atol=1e-5), (out, ref_fn(x))

    # 2) Unaligned batch: exercises the pad-to-128 path.
    B2 = 300
    x2 = jax.random.normal(kx, (B2, 1), dtype=jnp.float32)
    out2 = jax.block_until_ready(quantum_model_forward(x2, w, b, small_batch_threshold=0))
    assert out2.shape == (B2, 1)
    assert jnp.allclose(out2, ref_fn(x2), atol=1e-5)

    # 3) Aligned batch with >= 2 grid steps and a partial trailing block.
    B3 = 2560  # rows = 20 -> tile_rows = 16 -> grid = (2,), last block partial
    x3 = jax.random.normal(kx, (B3, 1), dtype=jnp.float32)
    out3 = jax.block_until_ready(quantum_model_forward(x3, w, b, small_batch_threshold=0))
    assert out3.shape == (B3, 1)
    assert jnp.allclose(out3, ref_fn(x3), atol=1e-5)

    # 4) bf16 I/O path (dtype-preserving HBM traffic).
    B4 = 4096  # rows = 32, bf16 sublane packing 16 -> tile_rows = 16 -> grid = (2,)
    x4 = jax.random.normal(kx, (B4, 1), dtype=jnp.float32).astype(jnp.bfloat16)
    out4 = jax.block_until_ready(quantum_model_forward(x4, w, b, small_batch_threshold=0))
    assert out4.shape == (B4, 1) and out4.dtype == jnp.bfloat16
    assert jnp.allclose(out4.astype(jnp.float32), ref_fn(x4), atol=2e-2)

    # 5) Small-batch fallback (default threshold -> fused XLA path).
    out_fb = jax.block_until_ready(quantum_model_forward(x, w, b))
    assert jnp.allclose(out_fb, ref_fn(x), atol=1e-5)

    print("KERNEL_OK")
</pallas_src>

<mosaic_0001>
module attributes {stable_mosaic.version = 11 : i64} {
  func.func @_quantum_model_kernel(%arg0: i32, %arg1: memref<2xf32, #tpu.memory_space<smem>>, %arg2: memref<1x128xf32, #tpu.memory_space<vmem>>, %arg3: memref<1x128xf32, #tpu.memory_space<vmem>>) attributes {dimension_semantics = [#tpu.dimension_semantics<parallel>], iteration_bounds = array<i64: 1>, scalar_prefetch = 0 : i64, scratch_operands = 0 : i64, tpu.core_type = #tpu.core_type<tc>, window_params = [{transform_indices = @transform_0, window_bounds = array<i64: 2>}, {transform_indices = @transform_1, window_bounds = array<i64: 1, 128>}, {transform_indices = @transform_2, window_bounds = array<i64: 1, 128>}]} {
    %c0 = arith.constant 0 : index
    %0 = memref.load %arg1[%c0] : memref<2xf32, #tpu.memory_space<smem>>
    %c1 = arith.constant 1 : index
    %1 = memref.load %arg1[%c1] : memref<2xf32, #tpu.memory_space<smem>>
    %c0_0 = arith.constant 0 : index
    %c0_1 = arith.constant 0 : index
    %2 = vector.load %arg2[%c0_0, %c0_1] : memref<1x128xf32, #tpu.memory_space<vmem>>, vector<1x128xf32>
    %3 = vector.broadcast %0 : f32 to vector<1x128xf32>
    %4 = arith.mulf %2, %3 : vector<1x128xf32>
    %5 = vector.broadcast %1 : f32 to vector<1x128xf32>
    %6 = arith.addf %4, %5 : vector<1x128xf32>
    %7 = math.cos %6 : vector<1x128xf32>
    %8 = arith.mulf %7, %7 : vector<1x128xf32>
    %c0_2 = arith.constant 0 : index
    %c0_3 = arith.constant 0 : index
    %9 = vector.load %arg3[%c0_2, %c0_3] : memref<1x128xf32, #tpu.memory_space<vmem>>, vector<1x128xf32>
    tpu.vector_store %arg3[%c0_2, %c0_3], %8 {strides = array<i32>} : memref<1x128xf32, #tpu.memory_space<vmem>>, vector<1x128xf32>,
    return
  }
  func.func @transform_0(%arg0: i32) -> i32 {
    %c0_i32 = arith.constant 0 : i32
    %c0_i32_0 = arith.constant 0 : i32
    return %c0_i32 : i32
  }
  func.func @transform_1(%arg0: i32) -> (i32, i32) {
    %c0_i32 = arith.constant 0 : i32
    %c0_i32_0 = arith.constant 0 : i32
    return %arg0, %c0_i32 : i32, i32
  }
  func.func @transform_2(%arg0: i32) -> (i32, i32) {
    %c0_i32 = arith.constant 0 : i32
    %c0_i32_0 = arith.constant 0 : i32
    return %arg0, %c0_i32 : i32, i32
  }
}

</mosaic_0001>

<bundles_post_ra>
// kernel: tpu_custom_call.1
= control target key start
LH: loop header
LB: loop body
LE: loop exit
PB: predicated region body
PF: predicated region fallthrough
CT: control target
= control target key end

     0   :  { %7 = vsyncpa [#allocation4], 0  ;;  %s256_s0 = inlined_call_operand.hbm [shape: f32[2], index: 0, kind: input, shape index: {}]   ;;  %s257_s1 = inlined_call_operand.vmem [shape: f32[1,128], index: 1, kind: input, shape index: {}]   ;;  %s258_s2 = inlined_call_operand.hbm [shape: f32[1,128], index: 2, kind: output, shape index: {}]  }
   0x1   :  { %8 = vsyncpa [#allocation3], 0  ;;  %s203_s9 = smov [#allocation2]  }
   0x2   :  { %16 = dma.hbm_to_smem %s256_s0, 16, %s203_s9, [#allocation4]  }
   0x3   :  { %199 = dma.done.wait [#allocation4], 16  }
   0x4   :  { %200 = vsyncadd [#allocation4], 4294967280 }
   0x5   :  { %22 = sfence }
   0x6   :  { %s23_s12 = sld [smem:[#allocation2]]  ;;  %v25_v0 = vld [vmem:[%s257_s1] sm:$0x1]  ;;  %v204_v16 = vmov 683565275   ;;  %s210_s0 = smov [#allocation5]  }
   0x7   :  { %s150_s13 = sld [smem:[#allocation2 + $0x1]]  ;;  %v205_v18 = vmov 2475754826   ;;  %v206_v20 = vmov 2131351028   ;;  %s141_s1 = sshll.u32 %s210_s0, 4  ;;  %s142_s1 = int_to_ptr.vmem [resolvable:$true] %s141_s1 }
   0x8   :  { %v207_v22 = vmov 2102212464   ;;  %v208_v24 = vmov 920167782   ;;  %v209_v31 = vmov 1326507024   ;;  %p184_p1 = scmp.lt.s32.totalorder %s142_s1, %s142_s1 }
   0x9   :  { %s179_s16 = scalar_lea.vmem %s142_s1, 16  ;;  %s183_s17 = scalar_lea.vmem %s142_s1, 32 }
   0xa   :  { %p180_p0 = scmp.ne.s32.totalorder %s142_s1, %s179_s16  ;;  %p185_p2 = scmp.lt.s32.totalorder %s183_s17, %s179_s16 }
   0xc   :  { %v26_v1 = vstv %s23_s12  ;;  %p186_p3 = por %p185_p2, %p184_p1 }
   0xd   :  { %v27_v2 = vmul.f32 %v26_v1, %v25_v0  ;;  %v28_v3 = vstv %s150_s13 }
   0xe   :  { %p187_p4 = pnand %p186_p3, %p180_p0 }
   0xf   :  { %v232_v4 = vadd.f32 %v28_v3, %v27_v2 }
  0x11   :  { %v33_v5 = vand.u32 2139095040, %v232_v4  ;;  %v30_v7 = vand.u32 2147483647, %v232_v4  ;;  %vm32_vm7 = vcmp.lt.s32.totalorder %v232_v4, 0  ;;  %vm122_vm12 = vweird.f32 %v232_v4 }
  0x13   :  { %v34_v6 = vshrl.u32 %v33_v5, 23  ;;  %v37_v10 = vand.u32 8388607, %v30_v7  ;;  %vm31_vm8 = vcmp.le.f32.partialorder %v30_v7, 0.7853982 }
  0x15   :  { %v151_v8 = vadd.s32 4294967169, %v34_v6  ;;  %v38_v13 = vor.u32 8388608, %v37_v10 }
  0x17   :  { %v40_v9 = vadd.s32 1, %v151_v8  ;;  %v78_v33 = vshll.u32 %v38_v13, 8 }
  0x19   :  { %vm41_vm0 = vcmp.gt.s32.totalorder %v40_v9, 0 }
  0x1a   :  { %v42_v11 = vsel %vm41_vm0, %v40_v9, 0 }
  0x1b   :  { %v44_v12 = vand.u32 31, %v42_v11  ;;  %v43_v14 = vshrl.u32 %v42_v11, 5 }
  0x1d   :  { %v45_v15 = vsub.s32 32, %v44_v12  ;;  %v47_v17 = vshll.u32 %v204_v16, %v44_v12  ;;  %v50_v19 = vshll.u32 %v205_v18, %v44_v12  ;;  %v53_v21 = vshll.u32 %v206_v20, %v44_v12 }
  0x1e   :  { %v56_v23 = vshll.u32 %v207_v22, %v44_v12  ;;  %v59_v25 = vshll.u32 %v208_v24, %v44_v12  ;;  %vm62_vm1 = vcmp.lt.s32.totalorder %v43_v14, 1  ;;  %vm65_vm2 = vcmp.lt.s32.totalorder %v43_v14, 4 }
  0x1f   :  { %v46_v26 = vshrl.u32 %v204_v16, %v45_v15  ;;  %v48_v27 = vshrl.u32 %v205_v18, %v45_v15  ;;  %v51_v28 = vshrl.u32 %v206_v20, %v45_v15  ;;  %v54_v29 = vshrl.u32 %v207_v22, %v45_v15 }
  0x20   :  { %v57_v30 = vshrl.u32 %v208_v24, %v45_v15  ;;  %v60_v32 = vshrl.u32 %v209_v31, %v45_v15  ;;  %vm63_vm3 = vcmp.lt.s32.totalorder %v43_v14, 2  ;;  %vm64_vm4 = vcmp.lt.s32.totalorder %v43_v14, 3 }
  0x21   :  { %v49_v34 = vor.u32 %v48_v27, %v47_v17  ;;  %v52_v35 = vor.u32 %v51_v28, %v50_v19  ;;  %v55_v36 = vor.u32 %v54_v29, %v53_v21 }
  0x22   :  { %v58_v37 = vor.u32 %v57_v30, %v56_v23  ;;  %v61_v38 = vor.u32 %v60_v32, %v59_v25 }
  0x23   :  { %v66_v39 = vsel %vm62_vm1, %v46_v26, %v49_v34  ;;  %v67_v40 = vsel %vm65_vm2, %v55_v36, 2102212464  ;;  %v70_v41 = vsel %vm62_vm1, %v49_v34, %v52_v35  ;;  %v74_v42 = vsel %vm62_vm1, %v52_v35, %v55_v36 }
  0x24   :  { %v68_v43 = vsel %vm64_vm4, %v52_v35, %v67_v40  ;;  %v71_v44 = vsel %vm65_vm2, %v58_v37, 920167782  ;;  %v75_v45 = vsel %vm65_vm2, %v61_v38, 1326507024 }
  0x25   :  { %v72_v46 = vsel %vm64_vm4, %v55_v36, %v71_v44  ;;  %v76_v47 = vsel %vm64_vm4, %v58_v37, %v75_v45  ;;  %v69_v48 = vsel %vm63_vm3, %v66_v39, %v68_v43 }
  0x26   :  { %v73_v49 = vsel %vm63_vm3, %v70_v41, %v72_v46  ;;  %v77_v50 = vsel %vm63_vm3, %v74_v42, %v76_v47  ;;  %v85_v55 = vmul.u32 %v78_v33, %v69_v48 }
  0x27   :  { %v238_v51 = vmul.u32.u64.low %v78_v33, %v77_v50  ;;  %v239_v52 = vmul.u32.u64.high %v78_v33, %v77_v50, %v238_v51  ;;  %v241_v53 = vmul.u32.u64.low %v78_v33, %v73_v49  ;;  %v242_v54 = vmul.u32.u64.high %v78_v33, %v73_v49, %v241_v53 }
  0x29   :  { %vm87_vm5 = vc.u32 %v239_v52, %v241_v53  ;;  %v88_v56 = vadd.s32 1, %v242_v54  ;;  %v86_v3 = vadd.s32 %v241_v53, %v239_v52 }
  0x2b   :  { %v89_v57 = vsel %vm87_vm5, %v88_v56, %v242_v54 }
  0x2c   :  { %v90_v58 = vadd.s32 %v89_v57, %v85_v55 }
  0x2e   :  { %v91_v59 = vadd.s32 536870912, %v90_v58 }
  0x30   :  { %v92_v60 = vshrl.u32 %v91_v59, 30 }
  0x32   :  { %v93_v61 = vshll.u32 %v92_v60, 30  ;;  %v116_v20 = vsub.s32 4, %v92_v60 }
  0x34   :  { %v94_v62 = vsub.s32 %v90_v58, %v93_v61  ;;  %v117_v22 = vsel %vm32_vm7, %v116_v20, %v92_v60 }
  0x35   :  { %v119_v23 = vsel %vm31_vm8, 0, %v117_v22 }
  0x36   :  { %v96_v63 = vsub.s32 0, %v94_v62  ;;  %v123_v24 = vand.u32 3, %v119_v23 }
  0x38   :  { %v152_v0 = vmin.u32 %v96_v63, %v94_v62  ;;  %vm128_vm9 = vcmp.eq.s32.totalorder %v123_v24, 2  ;;  %vm125_vm10 = vcmp.eq.s32.totalorder %v123_v24, 0  ;;  %vm124_vm11 = vcmp.lt.s32.totalorder %v123_v24, 2 }
  0x3a   :  { %v98_v1 = vclz %v152_v0 }
  0x3c   :  { %v153_v2 = vadd.s32 4294967294, %v98_v1 }
  0x3e   :  { %vm154_vm6 = vcmp.lt.s32.totalorder %v153_v2, 0 }
  0x3f   :  { %v101_v5 = vsel %vm154_vm6, 0, %v153_v2 }
  0x40   :  { %v102_v6 = vsub.s32 32, %v101_v5  ;;  %v103_v8 = vshll.u32 %v94_v62, %v101_v5  ;;  %v106_v9 = vsub.s32 4294967266, %v101_v5 }
  0x42   :  { %v104_v10 = vshrl.u32 %v86_v3, %v102_v6  ;;  %v107_v11 = vadd.s32 127, %v106_v9 }
  0x44   :  { %v105_v12 = vor.u32 %v104_v10, %v103_v8  ;;  %v108_v13 = vshll.u32 %v107_v11, 23 }
  0x46   :  { %v109_v14 = vor.u32 4788187, %v108_v13  ;;  %v112_v15 = vcvt.s32.f32 %v105_v12 }
  0x48   :  { %v110_v16 = vand.u32 2147483647, %v109_v14 }
  0x4a   :  { %v113_v17 = vmul.f32 %v112_v15, %v110_v16 }
  0x4c   :  { %v114_v18 = vxor.u32 2147483648, %v113_v17 }
  0x4e   :  { %v115_v19 = vsel %vm32_vm7, %v114_v18, %v113_v17 }
  0x4f   :  { %v118_v21 = vsel %vm31_vm8, %v232_v4, %v115_v19 }
  0x50   :  { %167 = vcosq.f32 %v118_v21 }
  0x51   :  { %169 = vsinq.f32 %v118_v21 }
  0x5d   :  { %v168_v25 = vpop.eup %167 }
  0x5e   :  { %v170_v26 = vpop.eup %169  ;;  %v129_v27 = vxor.u32 2147483648, %v168_v25 }
  0x5f   :  { %v126_v28 = vxor.u32 2147483648, %v170_v26 }
  0x60   :  { %v130_v7 = vsel %vm128_vm9, %v129_v27, %v170_v26 }
  0x61   :  { %v127_v29 = vsel %vm125_vm10, %v168_v25, %v126_v28 }
  0x62   :  { %v131_v30 = vsel %vm124_vm11, %v127_v29, %v130_v7 }
  0x63   :  { %v132_v31 = vsel %vm122_vm12, nan, %v131_v30 }
  0x64   :  { %v133_v32 = vmul.f32 %v132_v31, %v132_v31 }
  0x66   :  { %134 = vst [vmem:[#allocation5] sm:$0x1] %v133_v32 }
  0x67   :  { %190 = shalt.err (!%p187_p4)
}
  0x68   :  { %144 = dma.vmem_to_hbm [thread:$0]  %s142_s1, 16, %s258_s2, [#allocation3]  }
  0x69   :  { %201 = dma.done.wait [#allocation3], 16  }
  0x6a   :  { %202 = vsyncadd [#allocation3], 4294967280 }
  0x6b   :  { %148 = vsyncpa [#allocation3], 1 }
  0x6c   :  { %149 = vsyncpa [#allocation4], 1 }

</bundles_post_ra>
